<compile_context>
chip_gen: v7x
topology: tpu7x:2x2x1
jax: 0.10.0
libtpu: 0.0.40
codegen_flags: <defaults>
</compile_context>

<pallas_src>
import functools

import jax
import jax.numpy as jnp
from jax.experimental import pallas as pl
from jax.experimental.pallas import tpu as pltpu


def _round_up(x, m):
    return (x + m - 1) // m * m


# ---------------------------------------------------------------------------
# Kernel: K-tiled (X @ W) accumulation into the resident output block,
# then Lp row-normalization on the last K step.
#   x_ref: (TB, TK) bf16    w_ref: (TK, Dp) bf16    b_ref: (1, Dp) f32
#   o_ref: (TB, Dp) f32  (resident across K axis -> also the accumulator)
# ---------------------------------------------------------------------------
def _crd_kernel(x_ref, w_ref, b_ref, o_ref, *, power):
    k = pl.program_id(1)

    @pl.when(k == 0)
    def _():
        # Fuse the bias add into the accumulator init.
        o_ref[...] = jnp.broadcast_to(b_ref[...], o_ref.shape)

    o_ref[...] += jnp.dot(x_ref[...], w_ref[...],
                          preferred_element_type=jnp.float32)

    @pl.when(k == pl.num_programs(1) - 1)
    def _():
        z = o_ref[...]                                      # (TB, Dp) f32
        if power == 2:
            # L2: out = z * rsqrt(sum(z^2)); rsqrt runs on the EUP slot.
            inv = jax.lax.rsqrt(jnp.sum(z * z, axis=-1, keepdims=True))
        else:
            norm = jnp.sum(z ** power, axis=-1, keepdims=True) ** (1.0 / power)
            inv = pl.reciprocal(norm, approx=True)
        o_ref[...] = (z * inv).astype(o_ref.dtype)


def _pad_cast(a, shape, dtype):
    """Zero-pad `a` up to `shape` and cast; no-op when already the right form."""
    if a.shape == shape and a.dtype == dtype:
        return a
    out = jnp.zeros(shape, dtype)
    return out.at[tuple(slice(0, s) for s in a.shape)].set(a.astype(dtype))


# ---------------------------------------------------------------------------
# Wrapper: flatten(x, 1) -> Linear(W, b) -> Lp-normalize rows.
#   x: (N, ...) features   w: (F, D)   b: (D,)   returns (N, D) f32
# ---------------------------------------------------------------------------
def linear4crd_secondary_forward(x, w, b, *, power=2, tb=256, tk=512):
    N = x.shape[0]
    x_flat = x.reshape(N, -1)
    F = x_flat.shape[1]
    D = w.shape[1]

    # Hardware-friendly padded sizes (zero padding is mathematically a no-op
    # for both the matmul and the norm).
    Dp = _round_up(D, 128)                    # lane-dense output / weight cols
    TB = min(tb, _round_up(N, 8))             # sublane-aligned row tile
    Bp = _round_up(N, TB)
    TK = min(tk, _round_up(F, 128))           # contraction tile
    Fp = _round_up(F, TK)

    xp = _pad_cast(x_flat, (Bp, Fp), jnp.bfloat16)
    wp = _pad_cast(w, (Fp, Dp), jnp.bfloat16)
    bp = _pad_cast(b.reshape(1, D), (1, Dp), jnp.float32)

    out = pl.pallas_call(
        functools.partial(_crd_kernel, power=power),
        out_shape=jax.ShapeDtypeStruct((Bp, Dp), jnp.float32),
        grid_spec=pltpu.PrefetchScalarGridSpec(
            num_scalar_prefetch=0,
            grid=(Bp // TB, Fp // TK),
            in_specs=[
                pl.BlockSpec((TB, TK), lambda i, k: (i, k)),   # x row/K tile
                pl.BlockSpec((TK, Dp), lambda i, k: (k, 0)),   # W K tile
                pl.BlockSpec((1, Dp), lambda i, k: (0, 0)),    # bias (resident)
            ],
            out_specs=pl.BlockSpec((TB, Dp), lambda i, k: (i, 0)),
        ),
        compiler_params=pltpu.CompilerParams(
            dimension_semantics=("parallel", "arbitrary")),
    )(xp, wp, bp)

    return out[:N, :D]


# ---------------------------------------------------------------------------
# Pure-JAX reference (same math / same bf16 operand precision, no Pallas)
# ---------------------------------------------------------------------------
def reference(x, w, b, power=2):
    N = x.shape[0]
    xf = x.reshape(N, -1).astype(jnp.bfloat16).astype(jnp.float32)
    wf = w.astype(jnp.bfloat16).astype(jnp.float32)
    z = xf @ wf + b.astype(jnp.float32)
    norm = jnp.sum(z ** power, axis=1, keepdims=True) ** (1.0 / power)
    return z / norm


if __name__ == "__main__":
    key = jax.random.PRNGKey(0)
    k_x, k_w, k_b = jax.random.split(key, 3)

    # Feature map from `input_module_path`: (batch=2, channels=4, 16x16)
    # -> flatten(1) gives F = 4*16*16 = 1024; CRD embedding dim D = 128.
    N, C, H, W = 2, 4, 16, 16
    F = C * H * W
    D = 128
    power = 2

    x = jax.random.normal(k_x, (N, C, H, W), jnp.float32)
    w = jax.random.normal(k_w, (F, D), jnp.float32) * (1.0 / jnp.sqrt(F))
    b = 0.1 * jax.random.normal(k_b, (D,), jnp.float32)

    out = linear4crd_secondary_forward(x, w, b, power=power)
    out = jax.block_until_ready(out)

    ref = reference(x, w, b, power=power)
    assert out.shape == (N, D)
    assert bool(jnp.allclose(out, ref, rtol=1e-3, atol=1e-4)), \
        float(jnp.max(jnp.abs(out - ref)))

    print("KERNEL_OK")
</pallas_src>

<mosaic_0001>
module attributes {stable_mosaic.version = 11 : i64} {
  func.func @_crd_kernel(%arg0: i32, %arg1: i32, %arg2: memref<8x512xbf16, #tpu.memory_space<vmem>>, %arg3: memref<512x128xbf16, #tpu.memory_space<vmem>>, %arg4: memref<1x128xf32, #tpu.memory_space<vmem>>, %arg5: memref<8x128xf32, #tpu.memory_space<vmem>>) attributes {dimension_semantics = [#tpu.dimension_semantics<parallel>, #tpu.dimension_semantics<arbitrary>], iteration_bounds = array<i64: 1, 2>, scalar_prefetch = 0 : i64, scratch_operands = 0 : i64, tpu.core_type = #tpu.core_type<tc>, window_params = [{transform_indices = @transform_0, window_bounds = array<i64: 8, 512>}, {transform_indices = @transform_1, window_bounds = array<i64: 512, 128>}, {pipeline_mode = #tpu.pipeline_mode<synchronous>, transform_indices = @transform_2, window_bounds = array<i64: 1, 128>}, {transform_indices = @transform_3, window_bounds = array<i64: 8, 128>}]} {
    %c0_i32 = arith.constant 0 : i32
    %0 = arith.cmpi eq, %arg1, %c0_i32 : i32
    %1 = arith.extui %0 : i1 to i32
    %c0_i32_0 = arith.constant 0 : i32
    %2 = arith.cmpi ne, %1, %c0_i32_0 : i32
    scf.if %2 {
      %c0_9 = arith.constant 0 : index
      %c0_10 = arith.constant 0 : index
      %12 = vector.load %arg4[%c0_9, %c0_10] : memref<1x128xf32, #tpu.memory_space<vmem>>, vector<1x128xf32>
      %13 = vector.shape_cast %12 : vector<1x128xf32> to vector<1x128xf32>
      %14 = vector.broadcast %13 : vector<1x128xf32> to vector<8x128xf32>
      %c0_11 = arith.constant 0 : index
      %c0_12 = arith.constant 0 : index
      %15 = vector.load %arg5[%c0_11, %c0_12] : memref<8x128xf32, #tpu.memory_space<vmem>>, vector<8x128xf32>
      tpu.vector_store %arg5[%c0_11, %c0_12], %14 {strides = array<i32>} : memref<8x128xf32, #tpu.memory_space<vmem>>, vector<8x128xf32>,
    } else {
    }
    %c0 = arith.constant 0 : index
    %c0_1 = arith.constant 0 : index
    %3 = vector.load %arg5[%c0, %c0_1] : memref<8x128xf32, #tpu.memory_space<vmem>>, vector<8x128xf32>
    %c0_2 = arith.constant 0 : index
    %c0_3 = arith.constant 0 : index
    %4 = vector.load %arg2[%c0_2, %c0_3] : memref<8x512xbf16, #tpu.memory_space<vmem>>, vector<8x512xbf16>
    %c0_4 = arith.constant 0 : index
    %c0_5 = arith.constant 0 : index
    %5 = vector.load %arg3[%c0_4, %c0_5] : memref<512x128xbf16, #tpu.memory_space<vmem>>, vector<512x128xbf16>
    %cst = arith.constant dense<0.000000e+00> : vector<8x128xf32>
    %6 = tpu.matmul %4, %5, %cst {dimension_numbers = #tpu.dot_dimension_numbers<[1], [0], [0], [1], [0, 0, 1, 1], [], []>} : vector<8x512xbf16>, vector<512x128xbf16>, vector<8x128xf32> -> vector<8x128xf32>
    %7 = arith.addf %3, %6 : vector<8x128xf32>
    %c0_6 = arith.constant 0 : index
    %c0_7 = arith.constant 0 : index
    %8 = vector.load %arg5[%c0_6, %c0_7] : memref<8x128xf32, #tpu.memory_space<vmem>>, vector<8x128xf32>
    tpu.vector_store %arg5[%c0_6, %c0_7], %7 {strides = array<i32>} : memref<8x128xf32, #tpu.memory_space<vmem>>, vector<8x128xf32>,
    %c1_i32 = arith.constant 1 : i32
    %9 = arith.cmpi eq, %arg1, %c1_i32 : i32
    %10 = arith.extui %9 : i1 to i32
    %c0_i32_8 = arith.constant 0 : i32
    %11 = arith.cmpi ne, %10, %c0_i32_8 : i32
    scf.if %11 {
      %c0_9 = arith.constant 0 : index
      %c0_10 = arith.constant 0 : index
      %12 = vector.load %arg5[%c0_9, %c0_10] : memref<8x128xf32, #tpu.memory_space<vmem>>, vector<8x128xf32>
      %13 = arith.mulf %12, %12 : vector<8x128xf32>
      %cst_11 = arith.constant dense<0.000000e+00> : vector<8xf32>
      %14 = vector.multi_reduction <add>, %13, %cst_11 [1] : vector<8x128xf32> to vector<8xf32>
      %15 = vector.shape_cast %14 : vector<8xf32> to vector<8x1xf32>
      %16 = math.rsqrt %15 : vector<8x1xf32>
      %17 = vector.broadcast %16 : vector<8x1xf32> to vector<8x128xf32>
      %18 = arith.mulf %12, %17 : vector<8x128xf32>
      %c0_12 = arith.constant 0 : index
      %c0_13 = arith.constant 0 : index
      %19 = vector.load %arg5[%c0_12, %c0_13] : memref<8x128xf32, #tpu.memory_space<vmem>>, vector<8x128xf32>
      tpu.vector_store %arg5[%c0_12, %c0_13], %18 {strides = array<i32>} : memref<8x128xf32, #tpu.memory_space<vmem>>, vector<8x128xf32>,
    } else {
    }
    return
  }
  func.func @transform_0(%arg0: i32, %arg1: i32) -> (i32, i32) {
    %c0_i32 = arith.constant 0 : i32
    return %arg0, %arg1 : i32, i32
  }
  func.func @transform_1(%arg0: i32, %arg1: i32) -> (i32, i32) {
    %c0_i32 = arith.constant 0 : i32
    %c0_i32_0 = arith.constant 0 : i32
    return %arg1, %c0_i32 : i32, i32
  }
  func.func @transform_2(%arg0: i32, %arg1: i32) -> (i32, i32) {
    %c0_i32 = arith.constant 0 : i32
    %c0_i32_0 = arith.constant 0 : i32
    %c0_i32_1 = arith.constant 0 : i32
    return %c0_i32, %c0_i32_0 : i32, i32
  }
  func.func @transform_3(%arg0: i32, %arg1: i32) -> (i32, i32) {
    %c0_i32 = arith.constant 0 : i32
    %c0_i32_0 = arith.constant 0 : i32
    return %arg0, %c0_i32 : i32, i32
  }
}

</mosaic_0001>

<bundles_post_ra>
// kernel: tpu_custom_call.1
= control target key start
LH: loop header
LB: loop body
LE: loop exit
PB: predicated region body
PF: predicated region fallthrough
CT: control target
= control target key end

     0   :  { %8 = vsyncpa [#allocation3], 0  ;;  %s1334_s0 = inlined_call_operand.hbm [shape: bf16[8,1024], index: 0, kind: input, shape index: {}]   ;;  %s1335_s1 = inlined_call_operand.hbm [shape: bf16[1024,128], index: 1, kind: input, shape index: {}]   ;;  %s1336_s2 = inlined_call_operand.vmem [shape: f32[1,128], index: 2, kind: input, shape index: {}]   ;;  %s1337_s3 = inlined_call_operand.hbm [shape: f32[8,128], index: 3, kind: output, shape index: {}]  }
   0x1   :  { %10 = vsyncpa [#allocation3 + $0x1], 0 }
   0x2   :  { %11 = vsyncpa [#allocation6], 0 }
   0x3   :  { %13 = vsyncpa [#allocation6 + $0x1], 0 }
   0x4   :  { %14 = vsyncpa [#allocation4], 0  ;;  %s1092_s12 = smov 0   ;;  %s1094_s13 = smov 0  }
   0x5   :  { %s1096_s14 = smov 0   ;;  %s1098_s15 = smov 0  }
   0x6   :  { %s1100_s16 = smov 0   ;;  %s1102_s17 = smov 0  }
   0x7 LB: > { %s713_s18 = sadd.s32 4294967295, %s1065_s17   ;;  %s29_s19 = sadd.s32 1, %s1061_s16  ;;  %s1065_s17 = sphi %s1102_s17, %s20_s17   ;;  %s1061_s16 = sphi %s1100_s16, %s1351_s16   ;;  %s1057_s15 = sphi %s1098_s15, %s1350_s15   ;;  %s1053_s14 = sphi %s1096_s14, %s1349_s14   ;;  %s1049_s13 = sphi %s1094_s13, %s1348_s13   ;;  %s1045_s12 = sphi %s1092_s12, %s1347_s12  }
   0x8   : > { %p30_p0 = scmp.ge.s32.totalorder %s29_s19, 2  ;;  %s41_s20 = sadd.s32 1, %s1053_s14 }
   0x9   : > { %p48_p1 = scmp.ne.s32.totalorder %s1053_s14, %s1049_s13  ;;  %p49_p2 = scmp.eq.s32.totalorder %s1065_s17, 0 }
   0xa   : > { %s1353_s19 = smov (%p30_p0, %s29_s19), 0  ;;  %p54_p4 = scmp.ne.s32.totalorder %s1049_s13, %s1045_s12 }
   0xb   : > { %p1128_p3 = por %p49_p2, %p48_p1  ;;  %s37_s22 = ssub.s32 %s1061_s16, %s1353_s19 }
   0xc   : > { %p55_p5 = scmp.eq.s32.totalorder %s713_s18, 0  ;;  %p39_p6 = scmp.eq.s32.totalorder %s37_s22, 0 }
   0xd   : > { %p829_p8 = scmp.lt.s32.totalorder %s1065_s17, 2  ;;  %s1146_s25 = sand.u32 1, %s1053_s14  }
   0xe   : > { %p1137_p7 = por %p55_p5, %p54_p4  ;;  %s768_s26 = sshll.u32 %s1061_s16, 8 }
   0xf   : > { %s1143_s24 = scalar_select %p39_p6, %s1053_s14, %s41_s20  }
  0x10   : > { %s1340_s23 = scalar_select %p1137_p7, 1, 0 }
  0x11   : > { %s716_s27 = sshll.u32 %s1146_s25, 4  ;;  %s1153_s30 = scalar_lea.hbm %s1334_s0, %s768_s26 }
  0x12   : > { %s158_s4 = scalar_lea.vmem [#allocation2], %s716_s27  ;;  %p1157_p9 = pnand %p829_p8, %p1128_p3 }
  0x13   : > { %s168_s5 = sshll.u32 %s158_s4, 4  ;;  %s155_s7 = scalar_lea.sflag [#allocation3], %s1146_s25  ;;  %s1161_s5 = int_to_ptr.vmem [resolvable:$true] %s168_s5 }
  0x14   : > { %s921_s8 = scalar_lea.hbm %s1153_s30, 256  ;;  %p923_p13 = pneg %p1157_p9 }
  0x15   : > { %p922_p12 = scmp.ne.s32.totalorder %s1153_s30, %s921_s8  ;;  %s926_s11 = scalar_lea.hbm %s1334_s0, 512 }
  0x16   : > { %p927_p2 = scmp.lt.u32.totalorder %s1153_s30, %s1334_s0  ;;  %p928_p3 = scmp.lt.u32.totalorder %s926_s11, %s921_s8 }
  0x17   : > { %p924_p0 = pnand %p923_p13, %p922_p12  ;;  %p930_p5 = scmp.lt.u32.totalorder %s921_s8, %s1153_s30 }
  0x18   : > { %p929_p4 = por %p928_p3, %p927_p2 }
  0x19   : > { %p925_p1 = pneg %p924_p0 }
  0x1a   : > { %p931_p6 = por %p930_p5, %p929_p4 }
  0x1c   : > { %p932_p8 = pnand %p931_p6, %p925_p1 }
  0x1e   : > { %935 = shalt.err (!%p932_p8)
}
  0x1f   : > { %s936_s21 = scalar_lea.vmem %s1161_s5, 256  ;;  %s1067_s22 = smov [#allocation2]  }
  0x20   : > { %p937_p12 = scmp.ne.s32.totalorder %s1161_s5, %s936_s21  ;;  %s941_s26 = sshll.u32 %s1067_s22, 4  ;;  %s942_s26 = int_to_ptr.vmem [resolvable:$false] %s941_s26 }
  0x21   : > { %s943_s27 = scalar_lea.vmem %s942_s26, 512  ;;  %p944_p11 = scmp.lt.s32.totalorder %s1161_s5, %s942_s26 }
  0x22   : > { %p939_p0 = pnand %p937_p12, %p923_p13  ;;  %p945_p2 = scmp.lt.s32.totalorder %s943_s27, %s936_s21 }
  0x24   : > { %p940_p10 = pneg %p939_p0  ;;  %p946_p3 = por %p945_p2, %p944_p11 }
  0x26   : > { %p947_p4 = pnand %p946_p3, %p940_p10 }
  0x28   : > { %950 = shalt.err (!%p947_p4)
}
  0x29   : > { %825 = dma.hbm_to_vmem [thread:$0]  (!%p1157_p9), %s1153_s30, 256, %s1161_s5, %s155_s7  }
  0x2a   : > { %p1342_p1 = scmp.lt.s32.totalorder %s1065_s17, 3  ;;  %p1343_p5 = scmp.ge.s32.totalorder %s1065_s17, 1 }
  0x2b   : > { %s719_s29 = sshll.u32 %s1146_s25, 8  ;;  %s769_s4 = sshll.u32 %s1061_s16, 12 }
  0x2c   : > { %p1195_p6 = pnand %p1343_p5, %p1342_p1  ;;  %s1204_s10 = scalar_lea.hbm %s1335_s1, %s769_s4 }
  0x2d   : > { %s179_s11 = scalar_lea.vmem [#allocation5], %s719_s29  ;;  %s176_s30 = scalar_lea.sflag [#allocation6], %s1146_s25 }
  0x2e   : > { %s186_s12 = sshll.u32 %s179_s11, 4  ;;  %s951_s5 = scalar_lea.hbm %s1204_s10, 4096  ;;  %s1206_s12 = int_to_ptr.vmem [resolvable:$true] %s186_s12 }
  0x2f   : > { %p952_p10 = scmp.ne.s32.totalorder %s1204_s10, %s951_s5  ;;  %s956_s21 = scalar_lea.hbm %s1335_s1, 8192 }
  0x30   : > { %p957_p12 = scmp.lt.u32.totalorder %s1204_s10, %s1335_s1  ;;  %p958_p0 = scmp.lt.u32.totalorder %s956_s21, %s951_s5 }
  0x31   : > { %p954_p11 = pnand %p952_p10, %p923_p13  ;;  %p960_p3 = scmp.lt.u32.totalorder %s951_s5, %s1204_s10 }
  0x32   : > { %p959_p2 = por %p958_p0, %p957_p12 }
  0x33   : > { %p955_p8 = pneg %p954_p11 }
  0x34   : > { %p961_p4 = por %p960_p3, %p959_p2 }
  0x36   : > { %p962_p1 = pnand %p961_p4, %p955_p8 }
  0x38   : > { %965 = shalt.err (!%p962_p1)
}
  0x39   : > { %s966_s27 = scalar_lea.vmem %s1206_s12, 4096  ;;  %s1068_s29 = smov [#allocation5]  }
  0x3a   : > { %p967_p5 = scmp.ne.s32.totalorder %s1206_s12, %s966_s27  ;;  %s971_s4 = sshll.u32 %s1068_s29, 4  ;;  %s972_s4 = int_to_ptr.vmem [resolvable:$false] %s971_s4 }
  0x3b   : > { %s973_s8 = scalar_lea.vmem %s972_s4, 8192  ;;  %p974_p7 = scmp.lt.s32.totalorder %s1206_s12, %s972_s4 }
  0x3c   : > { %p969_p10 = pnand %p967_p5, %p923_p13  ;;  %p975_p12 = scmp.lt.s32.totalorder %s973_s8, %s966_s27 }
  0x3e   : > { %p970_p11 = pneg %p969_p10  ;;  %p976_p0 = por %p975_p12, %p974_p7 }
  0x40   : > { %p977_p2 = pnand %p976_p0, %p970_p11 }
  0x42   : > { %980 = shalt.err (!%p977_p2)
}
  0x43   : > { %s1069_s9 = smov 64   ;;  %s1070_s11 = smov 4  }
  0x44   : > { %828 = dma.hbm_to_vmem [thread:$0]  (!%p1157_p9), %s1204_s10, 4096, %s1206_s12, %s176_s30, %s1069_s9, %s1069_s9, %s1070_s11  }
  0x45   : > { %198 = sbr.rel (%p1195_p6) target bundleno = 534 (0x216), region = 32  ;;  %s200_s5 = sand.u32 (!%p1195_p6), 1, %s1049_s13  }
  0x46   : > { %s723_s7 = sshll.u32 (!%p1195_p6), %s200_s5, 4  ;;  %s201_s20 = scalar_lea.sflag (!%p1195_p6), [#allocation3], %s200_s5 }
  0x47   : > { %s1237_s21 = scalar_lea.vmem (!%p1195_p6), [#allocation2], %s723_s7  ;;  %p1345_p7 = scmp.ne.s32.totalorder (!%p1195_p6), %s1340_s23, 0 }
  0x4c   : > { %1032 = dma.done.wait (%p1345_p7), %s201_s20, 256  }
  0x4d   : > { %1034 = vsyncadd (%p1345_p7), %s201_s20, 4294967040  ;;  %s724_s22 = sshll.u32 %s200_s5, 8  ;;  %s210_s6 = scalar_lea.sflag [#allocation6], %s200_s5 }
  0x4e   : > { %s1243_s25 = scalar_lea.vmem [#allocation5], %s724_s22 }
  0x4f   : > { %1036 = dma.done.wait (%p1345_p7), %s210_s6, 4096  }
  0x50   : > { %1038 = vsyncadd (%p1345_p7), %s210_s6, 4294963200  ;;  %p725_p9 = scmp.ne.s32.totalorder %s1057_s15, 0 }
  0x51   : > { %v726_v0 = vld [vmem:[%s1336_s2] ss:$0 sm:$0xff] (!%p725_p9) }
  0x52   : > { %242 = sbr.rel (%p725_p9) target bundleno = 89 (0x59), region = 44  ;;  %250 = vst [vmem:[#allocation7] sm:$0xff] (!%p725_p9), %v726_v0 }
  0x59 PF: > { %v883_v1 = vld [vmem:[%s1243_s25 + $0x40] sm:$0xff]   ;;  %v887_v5 = vld [vmem:[%s1243_s25 + $0x48] sm:$0xff]   ;;  %v891_v9 = vld [vmem:[%s1243_s25 + $0x50] sm:$0xff]   ;;  %p763_p13 = scmp.ne.s32.totalorder %s1057_s15, 1 }
  0x5a   : > { %v884_v2 = vld [vmem:[%s1243_s25 + $0xc0] sm:$0xff]   ;;  %770 = vmatprep.subr.bf16.mxu0 %v883_v1  ;;  %v888_v6 = vld [vmem:[%s1243_s25 + $0xc8] sm:$0xff]   ;;  %v892_v10 = vld [vmem:[%s1243_s25 + $0xd0] sm:$0xff]  }
  0x5b   : > { %v885_v3 = vld [vmem:[%s1243_s25] sm:$0xff]   ;;  %792 = vmatprep.subr.bf16.mxu1 %v884_v2  ;;  %v889_v7 = vld [vmem:[%s1243_s25 + $0x8] sm:$0xff]   ;;  %v893_v11 = vld [vmem:[%s1243_s25 + $0x10] sm:$0xff]  }
  0x5c   : > { %v886_v4 = vld [vmem:[%s1243_s25 + $0x80] sm:$0xff]   ;;  %771 = vmatpush3.bf16.msra.mxu0 %v885_v3  ;;  %v890_v8 = vld [vmem:[%s1243_s25 + $0x88] sm:$0xff]   ;;  %v894_v12 = vld [vmem:[%s1243_s25 + $0x90] sm:$0xff]  }
  0x5d   : > { %793 = vmatpush3.bf16.msra.mxu1 %v886_v4  ;;  %772 = vmatprep.subr.bf16.mxu0 %v887_v5  ;;  %v895_v13 = vld [vmem:[%s1243_s25 + $0x58] sm:$0xff]   ;;  %v899_v17 = vld [vmem:[%s1243_s25 + $0x60] sm:$0xff]   ;;  %v903_v21 = vld [vmem:[%s1243_s25 + $0x68] sm:$0xff]  }
  0x5e   : > { %794 = vmatprep.subr.bf16.mxu1 %v888_v6  ;;  %v896_v14 = vld [vmem:[%s1243_s25 + $0xd8] sm:$0xff]   ;;  %v900_v18 = vld [vmem:[%s1243_s25 + $0xe0] sm:$0xff]   ;;  %v904_v22 = vld [vmem:[%s1243_s25 + $0xe8] sm:$0xff]  }
  0x5f   : > { %v897_v15 = vld [vmem:[%s1243_s25 + $0x18] sm:$0xff]   ;;  %v901_v19 = vld [vmem:[%s1243_s25 + $0x20] sm:$0xff]   ;;  %v905_v23 = vld [vmem:[%s1243_s25 + $0x28] sm:$0xff]  }
  0x60   : > { %773 = vmatpush3.bf16.msra.mxu0 %v889_v7  ;;  %v898_v16 = vld [vmem:[%s1243_s25 + $0x98] sm:$0xff]   ;;  %v902_v20 = vld [vmem:[%s1243_s25 + $0xa0] sm:$0xff]   ;;  %v906_v24 = vld [vmem:[%s1243_s25 + $0xa8] sm:$0xff]  }
  0x61   : > { %795 = vmatpush3.bf16.msra.mxu1 %v890_v8  ;;  %774 = vmatprep.subr.bf16.mxu0 %v891_v9  ;;  %v907_v25 = vld [vmem:[%s1243_s25 + $0x70] sm:$0xff]   ;;  %v911_v29 = vld [vmem:[%s1243_s25 + $0x78] sm:$0xff]   ;;  %v251_v47 = vld [vmem:[#allocation7] sm:$0xff] }
  0x62   : > { %796 = vmatprep.subr.bf16.mxu1 %v892_v10  ;;  %v908_v26 = vld [vmem:[%s1243_s25 + $0xf0] sm:$0xff]   ;;  %v912_v30 = vld [vmem:[%s1243_s25 + $0xf8] sm:$0xff]  }
  0x63   : > { %v909_v27 = vld [vmem:[%s1243_s25 + $0x30] sm:$0xff]   ;;  %v913_v31 = vld [vmem:[%s1243_s25 + $0x38] sm:$0xff]  }
  0x64   : > { %775 = vmatpush3.bf16.msra.mxu0 %v893_v11  ;;  %v910_v28 = vld [vmem:[%s1243_s25 + $0xb0] sm:$0xff]   ;;  %v914_v32 = vld [vmem:[%s1243_s25 + $0xb8] sm:$0xff]  }
  0x65   : > { %797 = vmatpush3.bf16.msra.mxu1 %v894_v12  ;;  %776 = vmatprep.subr.bf16.mxu0 %v895_v13  ;;  %v252_v33 = vld [vmem:[%s1237_s21] sm:$0xff]  ;;  %v253_v34 = vld [vmem:[%s1237_s21 + $0x8] sm:$0xff] }
  0x66   : > { %798 = vmatprep.subr.bf16.mxu1 %v896_v14  ;;  %v727_v35 = vcombine.low %v252_v33, %v252_v33  ;;  %v728_v36 = vcombine.high %v252_v33, %v252_v33  ;;  %v729_v37 = vcombine.low %v253_v34, %v253_v34  ;;  %v730_v38 = vcombine.high %v253_v34, %v253_v34 }
  0x68   : > { %777 = vmatpush3.bf16.msra.mxu0 %v897_v15  ;;  %556 = vmatprep.mubr.bf16.mxu0 %v728_v36 }
  0x69   : > { %799 = vmatpush3.bf16.msra.mxu1 %v898_v16  ;;  %778 = vmatprep.subr.bf16.mxu0 %v899_v17 }
  0x6a   : > { %800 = vmatprep.subr.bf16.mxu1 %v900_v18  ;;  %596 = vmatprep.mubr.bf16.mxu1 %v730_v38 }
  0x6c   : > { %779 = vmatpush3.bf16.msra.mxu0 %v901_v19 }
  0x6d   : > { %801 = vmatpush3.bf16.msra.mxu1 %v902_v20  ;;  %780 = vmatprep.subr.bf16.mxu0 %v903_v21 }
  0x6e   : > { %802 = vmatprep.subr.bf16.mxu1 %v904_v22 }
  0x70   : > { %781 = vmatpush3.bf16.msra.mxu0 %v905_v23 }
  0x71   : > { %803 = vmatpush3.bf16.msra.mxu1 %v906_v24  ;;  %782 = vmatprep.subr.bf16.mxu0 %v907_v25 }
  0x72   : > { %804 = vmatprep.subr.bf16.mxu1 %v908_v26 }
  0x74   : > { %783 = vmatpush3.bf16.msra.mxu0 %v909_v27 }
  0x75   : > { %805 = vmatpush3.bf16.msra.mxu1 %v910_v28  ;;  %784 = vmatprep.subr.bf16.mxu0 %v911_v29 }
  0x76   : > { %806 = vmatprep.subr.bf16.mxu1 %v912_v30 }
  0x78   : > { %785 = vmatpush3.bf16.msra.mxu0 %v913_v31 }
  0x79   : > { %807 = vmatpush3.bf16.msra.mxu1 %v914_v32 }
  0x7b   : > { %557 = vmatmul.mubr.bf16.vlgmr.msra.gmra.mrb[0].mxu0 %v727_v35 }
  0x7c   : > { %597 = vmatmul.mubr.bf16.vlgmr.msra.gmra.mrb[0].mxu1 %v729_v37 }
 0x14e   : > { %v786_v39 = vpop.f32.mrb[0].mxu0 }
 0x14f   : > { %v808_v40 = vpop.f32.mrb[0].mxu1  ;;  %v787_v41 = vpop.f32.mrb[1].mxu0 }
 0x150   : > { %v809_v42 = vpop.f32.mrb[1].mxu1  ;;  %v788_v43 = vadd.f32 %v787_v41, %v786_v39  ;;  %v789_v45 = vpop.f32.mrb[2].mxu0 }
 0x151   : > { %v810_v44 = vadd.f32 %v809_v42, %v808_v40  ;;  %v811_v46 = vpop.f32.mrb[2].mxu1  ;;  %v790_v48 = vpop.f32.mrb[3].mxu0  ;;  %609 = sbr.rel (%p763_p13) target bundleno = 509 (0x1fd), region = 48 }
 0x152   : > { %v812_v49 = vpop.f32.mrb[3].mxu1 }
 0x153   : > { %v599_v50 = vadd.f32 %v810_v44, %v788_v43 }
 0x155   : > { %v604_v51 = vadd.f32 %v599_v50, %v251_v47 }
 0x157   : > { %605 = vst [vmem:[#allocation7] sm:$0xff] %v604_v51 }
 0x15e   : > { %v610_v52 = vld [vmem:[#allocation7] sm:$0xff] }
 0x15f   : > { %v611_v53 = vmul.f32 %v610_v52, %v610_v52 }
 0x161   : > { %612 = vadd.xlane.f32.xlu0 %v611_v53 }
 0x1ee   : > { %v613_v54 = vpop.xlane.xlu0 %612 }
 0x1ef   : > { %919 = vrsqrt.f32 %v613_v54 }
 0x1f9   : > { %v920_v55 = vpop.eup %919 }
 0x1fa   : > { %v615_v56 = vmul.f32 %v920_v55, %v610_v52 }
 0x1fc   : > { %616 = vst [vmem:[#allocation7] sm:$0xff] %v615_v56 }
 0x1fd PF: > { %p1290_p6 = scmp.eq.s32.totalorder %s713_s18, 1  ;;  %s1071_s12 = smov [#allocation7]  }
 0x1fe   : > { %s626_s30 = sshll.u32 %s1071_s12, 4  ;;  %s627_s30 = int_to_ptr.vmem [resolvable:$true] %s626_s30 }
 0x1ff   : > { %s981_s15 = scalar_lea.vmem %s627_s30, 128  ;;  %p988_p1 = scmp.lt.s32.totalorder %s627_s30, %s627_s30 }
 0x200   : > { %p982_p8 = scmp.ne.s32.totalorder %s627_s30, %s981_s15  ;;  %p989_p5 = scmp.lt.s32.totalorder %s981_s15, %s981_s15 }
 0x202   : > { %p983_p3 = pnand %p982_p8, %p1290_p6  ;;  %p990_p10 = por %p989_p5, %p988_p1 }
 0x204   : > { %p984_p4 = pneg %p983_p3 }
 0x206   : > { %p991_p11 = pnand %p990_p10, %p984_p4 }
 0x208   : > { %994 = shalt.err (!%p991_p11)
}
 0x209   : > { %s995_s18 = scalar_lea.hbm %s1337_s3, 128 }
 0x20a   : > { %p996_p12 = scmp.ne.s32.totalorder %s1337_s3, %s995_s18  ;;  %p1001_p7 = scmp.lt.u32.totalorder %s995_s18, %s1337_s3 }
 0x20c   : > { %p997_p0 = pnand %p996_p12, %p1290_p6 }
 0x20e   : > { %p998_p2 = pneg %p997_p0 }
 0x210   : > { %p1003_p9 = pnand %p1001_p7, %p998_p2 }
 0x212   : > { %1006 = shalt.err (!%p1003_p9)
}
 0x213   : > { %819 = dma.vmem_to_hbm [thread:$0]  (%p1290_p6), %s627_s30, 128, %s1337_s3, [#allocation4]  }
 0x214   : > { %1040 = dma.done.wait (%p1290_p6), [#allocation4], 128  }
 0x215   : > { %1042 = vsyncadd (%p1290_p6), [#allocation4], 4294967168 }
 0x216 PF: > { %s20_s17 = sadd.s32 1, %s1065_s17   ;;  %s1347_s12 = smov %s1049_s13 }
 0x217   : > { %p17_p13 = scmp.ge.s32.totalorder %s20_s17, 4   ;;  %s1348_s13 = smov %s1053_s14 }
 0x218   : > { %s1349_s14 = smov %s1143_s24  ;;  %s1350_s15 = smov %s1061_s16 }
 0x219   : > { %s1351_s16 = smov %s1353_s19  ;;  %19 = sbr.rel (!%p17_p13) target bundleno = 7 (0x7), region = 91 }
 0x220   :  { %639 = vsyncpa [#allocation3], 1 }
 0x221   :  { %641 = vsyncpa [#allocation3 + $0x1], 1 }
 0x222   :  { %642 = vsyncpa [#allocation6], 1 }
 0x223   :  { %644 = vsyncpa [#allocation6 + $0x1], 1 }
 0x224   :  { %645 = vsyncpa [#allocation4], 1 }
 0x225   :  { %647 = vsyncpa [#allocation4 + $0x1], 1 }

</bundles_post_ra>
